<compile_context>
chip_gen: v7x
topology: tpu7x:2x2x1
jax: 0.10.0
libtpu: 0.0.40
codegen_flags: <defaults>
</compile_context>

<pallas_src>
import jax
import jax.numpy as jnp
from jax.experimental import pallas as pl
from jax.experimental.pallas import tpu as pltpu


def _round_up(x, m):
    return (x + m - 1) // m * m


def _conv_relu_kernel(x_ref, wt_ref, b_ref, o_ref):
    """One output-row block of one image.

    x_ref : (TR + KH - 1, W*Cin)   input rows incl. halo, lane-dense
    wt_ref: (KH, W*Cin, OW*Cout)   block-Toeplitz weight, resident across the grid
    b_ref : (1, OW*Cout)           bias tiled over OW
    o_ref : (TR, OW*Cout)          output rows, lane-dense
    """
    tr, owc = o_ref.shape
    kh_taps = wt_ref.shape[0]

    xb = x_ref[...]                                    # (TR+KH-1, W*Cin)
    acc = jnp.zeros((tr, owc), jnp.float32)
    for kh in range(kh_taps):                          # static unroll; KH is small
        # Static sublane-offset slice feeding the MXU (no reshape / lane shuffle).
        acc = acc + jnp.dot(xb[kh:kh + tr, :], wt_ref[kh],
                            preferred_element_type=jnp.float32)
    acc = acc + b_ref[...].astype(jnp.float32)         # bias, broadcast over rows
    o_ref[...] = jnp.maximum(acc, 0.0).astype(o_ref.dtype)   # ReLU + lane-dense store


def conv_relu(x_nchw, w_oihw, bias, *, row_block=64, compute_dtype=jnp.float32):
    """ConvRelu forward (stride=1, padding=0, bn=False).

    x: (N, Cin, H, W), w: (Cout, Cin, KH, KW), bias: (Cout,) -> (N, Cout, OH, OW).
    """
    # TODO(synk): general stride/padding/dilation/groups kwargs and bn=True
    # (BatchNorm2d) are not implemented; module defaults (stride=1, padding=0,
    # bn=False) are assumed.
    N, Cin, H, W = x_nchw.shape
    Cout, Cin_w, KH, KW = w_oihw.shape
    assert Cin_w == Cin
    OH, OW = H - KH + 1, W - KW + 1
    WC, OWC = W * Cin, OW * Cout
    out_dtype = x_nchw.dtype

    # Output-row tile: multiple of 8 (sublane), capped by row_block.
    TR = min(_round_up(OH, 8), _round_up(row_block, 8))
    RB = -(-OH // TR)                 # cdiv
    OH_pad = RB * TR
    TRH = TR + KH - 1                 # rows per block incl. halo
    H_need = OH_pad + KH - 1

    # ---- input: NCHW -> (N, H, W*Cin), zero-pad rows, pre-slice per-block halos ----
    # (Callers that already hold NHWC activations can skip this transpose; it is
    #  kept only to preserve the PyTorch-facing layout.)
    x_nhwc = jnp.transpose(x_nchw, (0, 2, 3, 1)).astype(compute_dtype)
    x2 = x_nhwc.reshape(N, H, WC)
    if H_need > H:
        x2 = jnp.pad(x2, ((0, 0), (0, H_need - H), (0, 0)))
    row_ids = (jnp.arange(RB) * TR)[:, None] + jnp.arange(TRH)[None, :]  # (RB, TRH)
    x_blocks = x2[:, row_ids, :]                        # (N, RB, TRH, W*Cin)

    # ---- weight: OIHW -> block-Toeplitz (KH, W*Cin, OW*Cout) ----
    # WT[kh, (ow+kw)*Cin + ci, ow*Cout + co] = w[co, ci, kh, kw]; zeros elsewhere.
    # Each tap becomes one K = W*Cin contraction with a lane-dense OW*Cout output,
    # at the price of a ~W/KW-fold weight expansion (fine at these small sizes).
    # TODO(synk): for large W*Cin*OW*Cout the expanded weight no longer fits VMEM;
    # that regime needs an im2col-scratch variant instead.
    w_t = jnp.transpose(w_oihw, (2, 3, 1, 0)).astype(compute_dtype)  # (KH,KW,Cin,Cout)
    w_idx = jnp.arange(W)[:, None]                      # (W, 1)
    ow_idx = jnp.arange(OW)[None, :]                    # (1, OW)
    kw_idx = w_idx - ow_idx                             # (W, OW)
    valid = (kw_idx >= 0) & (kw_idx < KW)
    gathered = w_t[:, jnp.clip(kw_idx, 0, KW - 1)]      # (KH, W, OW, Cin, Cout)
    gathered = jnp.where(valid[None, :, :, None, None], gathered,
                         jnp.zeros((), compute_dtype))
    wt = jnp.transpose(gathered, (0, 1, 3, 2, 4)).reshape(KH, WC, OWC)

    b_owc = jnp.tile(bias.astype(compute_dtype), OW).reshape(1, OWC)

    out_padded = pl.pallas_call(
        _conv_relu_kernel,
        out_shape=jax.ShapeDtypeStruct((N, OH_pad, OWC), out_dtype),
        grid_spec=pltpu.PrefetchScalarGridSpec(
            num_scalar_prefetch=0,
            grid=(N, RB),
            in_specs=[
                # Per-(image, row-block) input rows incl. halo (double-buffered).
                pl.BlockSpec((None, None, TRH, WC), lambda n, r: (n, r, 0, 0)),
                # Toeplitz weight + bias: constant block index -> fetched once, resident.
                pl.BlockSpec((KH, WC, OWC), lambda n, r: (0, 0, 0)),
                pl.BlockSpec((1, OWC), lambda n, r: (0, 0)),
            ],
            out_specs=pl.BlockSpec((None, TR, OWC), lambda n, r: (n, r, 0)),
        ),
        compiler_params=pltpu.CompilerParams(
            # Every grid step is independent: let v7x's 2 TensorCores split the work.
            dimension_semantics=("parallel", "parallel")),
    )(x_blocks, wt, b_owc)

    out = out_padded[:, :OH, :].reshape(N, OH, OW, Cout)
    return jnp.transpose(out, (0, 3, 1, 2))             # back to NCHW


if __name__ == "__main__":
    # ConvRelu(in_channels=4, out_channels=8, kernel_size=3), bn=False.
    N, Cin, H, W = 2, 4, 16, 16
    Cout, KH, KW = 8, 3, 3

    key = jax.random.PRNGKey(0)
    kx, kw_key, kb = jax.random.split(key, 3)

    x = jax.random.normal(kx, (N, Cin, H, W), dtype=jnp.float32)
    # Deterministic "PyTorch-like" uniform init for conv weight/bias.
    fan_in = Cin * KH * KW
    bound = 1.0 / (fan_in ** 0.5)
    w = jax.random.uniform(kw_key, (Cout, Cin, KH, KW), jnp.float32, -bound, bound)
    b = jax.random.uniform(kb, (Cout,), jnp.float32, -bound, bound)

    # row_block=8 -> grid (N, 2): exercises the row-tiling / halo path.
    fwd = jax.jit(lambda xx, ww, bb: conv_relu(xx, ww, bb, row_block=8))
    out = jax.block_until_ready(fwd(x, w, b))

    # Reference: XLA conv (same semantics as nn.Conv2d stride=1, padding=0) + ReLU.
    ref = jax.lax.conv_general_dilated(
        x, w, window_strides=(1, 1), padding="VALID",
        dimension_numbers=("NCHW", "OIHW", "NCHW"))
    ref = jnp.maximum(ref + b[None, :, None, None], 0.0)

    assert out.shape == (N, Cout, H - KH + 1, W - KW + 1)
    assert jnp.allclose(out, ref, atol=1e-4, rtol=1e-4), \
        float(jnp.max(jnp.abs(out - ref)))

    print("KERNEL_OK")
</pallas_src>

<mosaic_0001>
module attributes {stable_mosaic.version = 11 : i64} {
  func.func @_conv_relu_kernel(%arg0: i32, %arg1: i32, %arg2: memref<1x1x10x64xf32, #tpu.memory_space<vmem>>, %arg3: memref<3x64x112xf32, #tpu.memory_space<vmem>>, %arg4: memref<1x112xf32, #tpu.memory_space<vmem>>, %arg5: memref<1x8x112xf32, #tpu.memory_space<vmem>>) attributes {dimension_semantics = [#tpu.dimension_semantics<parallel>, #tpu.dimension_semantics<parallel>], iteration_bounds = array<i64: 2, 2>, scalar_prefetch = 0 : i64, scratch_operands = 0 : i64, tpu.core_type = #tpu.core_type<tc>, window_params = [{transform_indices = @transform_0, window_bounds = array<i64: 1, 1, 10, 64>}, {pipeline_mode = #tpu.pipeline_mode<synchronous>, transform_indices = @transform_1, window_bounds = array<i64: 3, 64, 112>}, {pipeline_mode = #tpu.pipeline_mode<synchronous>, transform_indices = @transform_2, window_bounds = array<i64: 1, 112>}, {transform_indices = @transform_3, window_bounds = array<i64: 1, 8, 112>}]} {
    %c0 = arith.constant 0 : index
    %c0_0 = arith.constant 0 : index
    %c0_1 = arith.constant 0 : index
    %c0_2 = arith.constant 0 : index
    %0 = vector.load %arg2[%c0, %c0_0, %c0_1, %c0_2] : memref<1x1x10x64xf32, #tpu.memory_space<vmem>>, vector<1x1x10x64xf32>
    %1 = vector.shape_cast %0 : vector<1x1x10x64xf32> to vector<10x64xf32>
    %cst = arith.constant 0.000000e+00 : f32
    %2 = vector.broadcast %cst : f32 to vector<8x112xf32>
    %3 = vector.extract_strided_slice %1 {offsets = [0, 0], sizes = [8, 64], strides = [1, 1]} : vector<10x64xf32> to vector<8x64xf32>
    %c0_3 = arith.constant 0 : index
    %c0_4 = arith.constant 0 : index
    %c0_5 = arith.constant 0 : index
    %4 = vector.load %arg3[%c0_3, %c0_4, %c0_5] : memref<3x64x112xf32, #tpu.memory_space<vmem>>, vector<1x64x112xf32>
    %5 = vector.shape_cast %4 : vector<1x64x112xf32> to vector<64x112xf32>
    %cst_6 = arith.constant dense<0.000000e+00> : vector<8x112xf32>
    %6 = tpu.matmul %3, %5, %cst_6 {dimension_numbers = #tpu.dot_dimension_numbers<[1], [0], [0], [1], [0, 0, 1, 1], [], []>} : vector<8x64xf32>, vector<64x112xf32>, vector<8x112xf32> -> vector<8x112xf32>
    %7 = arith.addf %2, %6 : vector<8x112xf32>
    %8 = vector.extract_strided_slice %1 {offsets = [1, 0], sizes = [8, 64], strides = [1, 1]} : vector<10x64xf32> to vector<8x64xf32>
    %c1 = arith.constant 1 : index
    %c0_7 = arith.constant 0 : index
    %c0_8 = arith.constant 0 : index
    %9 = vector.load %arg3[%c1, %c0_7, %c0_8] : memref<3x64x112xf32, #tpu.memory_space<vmem>>, vector<1x64x112xf32>
    %10 = vector.shape_cast %9 : vector<1x64x112xf32> to vector<64x112xf32>
    %cst_9 = arith.constant dense<0.000000e+00> : vector<8x112xf32>
    %11 = tpu.matmul %8, %10, %cst_9 {dimension_numbers = #tpu.dot_dimension_numbers<[1], [0], [0], [1], [0, 0, 1, 1], [], []>} : vector<8x64xf32>, vector<64x112xf32>, vector<8x112xf32> -> vector<8x112xf32>
    %12 = arith.addf %7, %11 : vector<8x112xf32>
    %13 = vector.extract_strided_slice %1 {offsets = [2, 0], sizes = [8, 64], strides = [1, 1]} : vector<10x64xf32> to vector<8x64xf32>
    %c2 = arith.constant 2 : index
    %c0_10 = arith.constant 0 : index
    %c0_11 = arith.constant 0 : index
    %14 = vector.load %arg3[%c2, %c0_10, %c0_11] : memref<3x64x112xf32, #tpu.memory_space<vmem>>, vector<1x64x112xf32>
    %15 = vector.shape_cast %14 : vector<1x64x112xf32> to vector<64x112xf32>
    %cst_12 = arith.constant dense<0.000000e+00> : vector<8x112xf32>
    %16 = tpu.matmul %13, %15, %cst_12 {dimension_numbers = #tpu.dot_dimension_numbers<[1], [0], [0], [1], [0, 0, 1, 1], [], []>} : vector<8x64xf32>, vector<64x112xf32>, vector<8x112xf32> -> vector<8x112xf32>
    %17 = arith.addf %12, %16 : vector<8x112xf32>
    %c0_13 = arith.constant 0 : index
    %c0_14 = arith.constant 0 : index
    %18 = vector.load %arg4[%c0_13, %c0_14] : memref<1x112xf32, #tpu.memory_space<vmem>>, vector<1x112xf32>
    %19 = vector.broadcast %18 : vector<1x112xf32> to vector<8x112xf32>
    %20 = arith.addf %17, %19 : vector<8x112xf32>
    %cst_15 = arith.constant 0.000000e+00 : f32
    %21 = vector.broadcast %cst_15 : f32 to vector<8x112xf32>
    %22 = arith.maximumf %20, %21 : vector<8x112xf32>
    %c0_16 = arith.constant 0 : index
    %c0_17 = arith.constant 0 : index
    %c0_18 = arith.constant 0 : index
    %23 = vector.load %arg5[%c0_16, %c0_17, %c0_18] : memref<1x8x112xf32, #tpu.memory_space<vmem>>, vector<1x8x112xf32>
    %24 = vector.shape_cast %23 : vector<1x8x112xf32> to vector<8x112xf32>
    %25 = vector.shape_cast %22 : vector<8x112xf32> to vector<1x8x112xf32>
    tpu.vector_store %arg5[%c0_16, %c0_17, %c0_18], %25 {strides = array<i32>} : memref<1x8x112xf32, #tpu.memory_space<vmem>>, vector<1x8x112xf32>,
    return
  }
  func.func @transform_0(%arg0: i32, %arg1: i32) -> (i32, i32, i32, i32) {
    %c0_i32 = arith.constant 0 : i32
    %c0_i32_0 = arith.constant 0 : i32
    %c0_i32_1 = arith.constant 0 : i32
    return %arg0, %arg1, %c0_i32, %c0_i32_0 : i32, i32, i32, i32
  }
  func.func @transform_1(%arg0: i32, %arg1: i32) -> (i32, i32, i32) {
    %c0_i32 = arith.constant 0 : i32
    %c0_i32_0 = arith.constant 0 : i32
    %c0_i32_1 = arith.constant 0 : i32
    %c0_i32_2 = arith.constant 0 : i32
    return %c0_i32, %c0_i32_0, %c0_i32_1 : i32, i32, i32
  }
  func.func @transform_2(%arg0: i32, %arg1: i32) -> (i32, i32) {
    %c0_i32 = arith.constant 0 : i32
    %c0_i32_0 = arith.constant 0 : i32
    %c0_i32_1 = arith.constant 0 : i32
    return %c0_i32, %c0_i32_0 : i32, i32
  }
  func.func @transform_3(%arg0: i32, %arg1: i32) -> (i32, i32, i32) {
    %c0_i32 = arith.constant 0 : i32
    %c0_i32_0 = arith.constant 0 : i32
    return %arg0, %arg1, %c0_i32 : i32, i32, i32
  }
}

</mosaic_0001>

<bundles_post_ra>
// kernel: tile.8
= control target key start
LH: loop header
LB: loop body
LE: loop exit
PB: predicated region body
PF: predicated region fallthrough
CT: control target
= control target key end

     0   :  { %s28_s0 = inlined_call_operand.vmem [shape: f32[8], index: 0, kind: input, shape index: {}]   ;;  %s29_s1 = inlined_call_operand.vmem [shape: f32[14,8], index: 1, kind: output, shape index: {}]  }
   0x1   :  { %v4_v0 = vld [vmem:[%s28_s0] ss:$0 sm:$0xff] }
   0x2   :  { %5 = vst [vmem:[%s29_s1] sm:$0xff] %v4_v0  ;;  %8 = vst [vmem:[%s29_s1 + $0x8] sm:$0xff] %v4_v0 }

// kernel: tile.9
= control target key start
LH: loop header
LB: loop body
LE: loop exit
PB: predicated region body
PF: predicated region fallthrough
CT: control target
= control target key end

     0   :  { %s115_s10 = smov 104   ;;  %s116_s11 = smov 88   ;;  %vm3_vm0 = vcmask 64512   ;;  %vm9_vm1 = vcmask 917312   ;;  %vm15_vm2 = vcmask 851712   ;;  %vm21_vm3 = vcmask 786112   ;;  %s183_s0 = inlined_call_operand.vmem [shape: f32[14,8], index: 0, kind: input, shape index: {}]   ;;  %s184_s1 = inlined_call_operand.vmem [shape: f32[1,112], index: 1, kind: output, shape index: {}]  }
   0x1   :  { %v89_v0 = vld [vmem:[%s183_s0 + $0xd] sm:$0x1]   ;;  %v91_v1 = vld [vmem:[%s183_s0 + $0xb] sm:$0x1]   ;;  %v90_v2 = vld [vmem:[%s183_s0 + $0xc] sm:$0x1]  }
   0x2   :  { %7 = vrot.lane.b32.xlu0 %v89_v0, %s115_s10  ;;  %19 = vrot.lane.b32.xlu1 %v91_v1, %s116_s11  ;;  %v92_v3 = vld [vmem:[%s183_s0 + $0xa] sm:$0x1]   ;;  %s117_s16 = smov 96   ;;  %s118_s17 = smov 80   ;;  %v93_v4 = vld [vmem:[%s183_s0 + $0x9] sm:$0x1]  }
   0x3   :  { %v94_v5 = vld [vmem:[%s183_s0 + $0x8] sm:$0x1]   ;;  %v2_v6 = vld [vmem:[%s183_s0] sm:$0x1]   ;;  %s119_s24 = smov 72   ;;  %s120_s25 = smov 64  }
   0x4   :  { %4 = vst.msk [vmem:[#allocation0] sm:$0x1] %vm3_vm0, %v2_v6   ;;  %v95_v7 = vld [vmem:[%s183_s0 + $0x7] sm:$0x1]   ;;  %v96_v8 = vld [vmem:[%s183_s0 + $0x6] sm:$0x1]  }
   0x5   :  { %s121_s30 = smov 56   ;;  %s122_s2 = smov 48   ;;  %v97_v9 = vld [vmem:[%s183_s0 + $0x5] sm:$0x1]   ;;  %v98_v10 = vld [vmem:[%s183_s0 + $0x4] sm:$0x1]  }
   0x6   :  { %13 = vrot.lane.b32.xlu0 %v90_v2, %s117_s16  ;;  %25 = vrot.lane.b32.xlu1 %v92_v3, %s118_s17  ;;  %s123_s7 = smov 40   ;;  %s124_s8 = smov 32   ;;  %v99_v11 = vld [vmem:[%s183_s0 + $0x3] sm:$0x1]   ;;  %v100_v12 = vld [vmem:[%s183_s0 + $0x2] sm:$0x1]  }
   0x7   :  { %s125_s13 = smov 24   ;;  %s126_s14 = smov 16   ;;  %v101_v13 = vld [vmem:[%s183_s0 + $0x1] sm:$0x1]   ;;  %vm27_vm4 = vcmask 720512   ;;  %vm33_vm5 = vcmask 654912  }
   0x8   :  { %s127_s0 = smov 8   ;;  %vm39_vm6 = vcmask 589312   ;;  %vm45_vm7 = vcmask 523712   ;;  %vm51_vm8 = vcmask 458112   ;;  %vm57_vm9 = vcmask 392512  }
   0x9   :  { %vm63_vm10 = vcmask 326912   ;;  %vm69_vm11 = vcmask 261312   ;;  %vm75_vm12 = vcmask 195712   ;;  %vm81_vm13 = vcmask 130112  }
   0xa   :  { %31 = vrot.lane.b32.xlu0 %v93_v4, %s119_s24  ;;  %37 = vrot.lane.b32.xlu1 %v94_v5, %s120_s25 }
   0xe   :  { %43 = vrot.lane.b32.xlu0 %v95_v7, %s121_s30  ;;  %49 = vrot.lane.b32.xlu1 %v96_v8, %s122_s2 }
  0x12   :  { %55 = vrot.lane.b32.xlu0 %v97_v9, %s123_s7  ;;  %61 = vrot.lane.b32.xlu1 %v98_v10, %s124_s8 }
  0x16   :  { %67 = vrot.lane.b32.xlu0 %v99_v11, %s125_s13  ;;  %73 = vrot.lane.b32.xlu1 %v100_v12, %s126_s14 }
  0x1a   :  { %79 = vrot.lane.b32.xlu0 %v101_v13, %s127_s0 }
  0x74   :  { %v8_v14 = vpop.permute.xlu0 %7   ;;  %v20_v15 = vpop.permute.xlu1 %19  }
  0x75   :  { %10 = vst.msk [vmem:[#allocation0] sm:$0x1] %vm9_vm1, %v8_v14  }
  0x78   :  { %v14_v16 = vpop.permute.xlu0 %13   ;;  %v26_v17 = vpop.permute.xlu1 %25  }
  0x79   :  { %16 = vst.msk [vmem:[#allocation0] sm:$0x1] %vm15_vm2, %v14_v16  }
  0x7a   :  { %22 = vst.msk [vmem:[#allocation0] sm:$0x1] %vm21_vm3, %v20_v15  }
  0x7b   :  { %28 = vst.msk [vmem:[#allocation0] sm:$0x1] %vm27_vm4, %v26_v17  }
  0x7c   :  { %v32_v18 = vpop.permute.xlu0 %31   ;;  %v38_v19 = vpop.permute.xlu1 %37  }
  0x7d   :  { %34 = vst.msk [vmem:[#allocation0] sm:$0x1] %vm33_vm5, %v32_v18  }
  0x7e   :  { %40 = vst.msk [vmem:[#allocation0] sm:$0x1] %vm39_vm6, %v38_v19  }
  0x80   :  { %v44_v20 = vpop.permute.xlu0 %43   ;;  %v50_v21 = vpop.permute.xlu1 %49  }
  0x81   :  { %46 = vst.msk [vmem:[#allocation0] sm:$0x1] %vm45_vm7, %v44_v20  }
  0x82   :  { %52 = vst.msk [vmem:[#allocation0] sm:$0x1] %vm51_vm8, %v50_v21  }
  0x84   :  { %v56_v22 = vpop.permute.xlu0 %55   ;;  %v62_v23 = vpop.permute.xlu1 %61  }
  0x85   :  { %58 = vst.msk [vmem:[#allocation0] sm:$0x1] %vm57_vm9, %v56_v22  }
  0x86   :  { %64 = vst.msk [vmem:[#allocation0] sm:$0x1] %vm63_vm10, %v62_v23  }
  0x88   :  { %v68_v24 = vpop.permute.xlu0 %67   ;;  %v74_v25 = vpop.permute.xlu1 %73  }
  0x89   :  { %70 = vst.msk [vmem:[#allocation0] sm:$0x1] %vm69_vm11, %v68_v24  }
  0x8a   :  { %76 = vst.msk [vmem:[#allocation0] sm:$0x1] %vm75_vm12, %v74_v25  }
  0x8c   :  { %v80_v26 = vpop.permute.xlu0 %79  }
  0x8d   :  { %82 = vst.msk [vmem:[#allocation0] sm:$0x1] %vm81_vm13, %v80_v26  }
  0x94   :  { %v86_v27 = vld [vmem:[#allocation0] sm:$0x1] }
  0x95   :  { %88 = vst [vmem:[%s184_s1] sm:$0x1] %v86_v27 }

// kernel: _lambda_.1
= control target key start
LH: loop header
LB: loop body
LE: loop exit
PB: predicated region body
PF: predicated region fallthrough
CT: control target
= control target key end

     0   :  { %s819_s12 = smov 0   ;;  %s821_s13 = smov 0   ;;  %s981_s0 = inlined_call_operand.vmem [shape: f32[2,2,10,64], index: 0, kind: input, shape index: {}]   ;;  %s982_s1 = inlined_call_operand.vmem [shape: f32[3,64,112], index: 1, kind: input, shape index: {}]   ;;  %s983_s2 = inlined_call_operand.vmem [shape: f32[1,112], index: 2, kind: input, shape index: {}]   ;;  %s984_s3 = inlined_call_operand.vmem [shape: f32[2,16,112], index: 3, kind: output, shape index: {}]  }
   0x1   :  { %s823_s14 = smov 0   ;;  %s825_s15 = smov 0  }
   0x2   :  { %s827_s16 = smov 0  }
   0x3 LB: > { %s22_s17 = sadd.s32 1, %s786_s14  ;;  %s25_s18 = sadd.s32 1, %s790_s15  ;;  %s794_s16 = sphi %s827_s16, %s13_s16   ;;  %s790_s15 = sphi %s825_s15, %s988_s15   ;;  %s786_s14 = sphi %s823_s14, %s987_s14   ;;  %s782_s13 = sphi %s821_s13, %s986_s13   ;;  %s778_s12 = sphi %s819_s12, %s985_s12  }
   0x4   : > { %p23_p0 = scmp.ge.s32.totalorder %s22_s17, 2  ;;  %p565_p1 = scmp.ge.s32.totalorder %s794_s16, 1 }
   0x5   : > { %p157_p2 = scmp.lt.s32.totalorder %s794_s16, 5 }
   0x6   : > { %s990_s17 = smov (%p23_p0, %s22_s17), 0  ;;  %s992_s18 = smov (!%p23_p0, %s25_s18), %s790_s15 }
   0x7   : > { %p158_p3 = pnand %p565_p1, %p157_p2  ;;  %p27_p4 = scmp.ge.s32.totalorder %s992_s18, 2 }
   0x8   : > { %v571_v0 = vld [vmem:[%s982_s1 + $0x40] sm:$0xff] (!%p158_p3)  ;;  %v572_v1 = vld [vmem:[%s982_s1 + $0x48] sm:$0xff] (!%p158_p3)  ;;  %v796_v3 = vmov (!%p158_p3), 0.0|0.0   ;;  %v573_v6 = vld [vmem:[%s982_s1 + $0x50] sm:$0xff] (!%p158_p3)  ;;  %p188_p5 = scmp.lt.s32.totalorder (!%p158_p3), %s782_s13, 1  ;;  %p190_p6 = scmp.lt.s32.totalorder (!%p158_p3), %s778_s12, 1 }
   0x9   : > { %s994_s18 = smov (%p27_p4, %s992_s18), 0  ;;  %161 = sbr.rel (%p158_p3) target bundleno = 262 (0x106), region = 32 }
   0xa   : > { %v207_v2 = vld [vmem:[%s982_s1] sm:$0xff] (!%p158_p3)  ;;  %677 = vmatprep.subr.bf16.mxu0 (!%p158_p3), %v796_v3  ;;  %v678_v4 = vpack.c.bf16 (!%p158_p3), %v572_v1, %v571_v0  ;;  %689 = vmatprep.subr.bf16.mxu1 (!%p158_p3), %v796_v3  ;;  %v208_v5 = vld [vmem:[%s982_s1 + $0x8] sm:$0xff] (!%p158_p3)  ;;  %v574_v7 = vld [vmem:[%s982_s1 + $0x58] sm:$0xff] (!%p158_p3)  ;;  %vm797_vm0 = vmmov (!%p158_p3), 0   ;;  %v798_v11 = vmov (!%p158_p3), 0.0   ;;  %vm226_vm1 = vcmask (!%p158_p3), 1046528  }
   0xb   : > { %v690_v8 = vpack.c.bf16 (!%p158_p3), %v208_v5, %v207_v2  ;;  %v209_v9 = vld [vmem:[%s982_s1 + $0x10] sm:$0xff] (!%p158_p3)  ;;  %v210_v10 = vld [vmem:[%s982_s1 + $0x18] sm:$0xff] (!%p158_p3)  ;;  %636 = vmatprep.mubr.msk.f32.mxu0 (!%p158_p3), %vm797_vm0, %v798_v11  ;;  %655 = vmatprep.mubr.msk.f32.mxu1 (!%p158_p3), %vm797_vm0, %v798_v11  ;;  %v681_v12 = vpack.c.bf16 (!%p158_p3), %v574_v7, %v573_v6  ;;  %v575_v14 = vld [vmem:[%s982_s1 + $0x60] sm:$0xff] (!%p158_p3)  ;;  %vm230_vm2 = vcmask (!%p158_p3), 523264   ;;  %vm384_vm3 = vcmask (!%p158_p3), 1045504  }
   0xc   : > { %679 = vmatpush3.bf16.msra.mxu0 (!%p158_p3), %v678_v4  ;;  %v693_v13 = vpack.c.bf16 (!%p158_p3), %v210_v10, %v209_v9  ;;  %v576_v15 = vld [vmem:[%s982_s1 + $0x68] sm:$0xff] (!%p158_p3)  ;;  %v211_v16 = vld [vmem:[%s982_s1 + $0x20] sm:$0xff] (!%p158_p3)  ;;  %v577_v20 = vld [vmem:[%s982_s1 + $0x70] sm:$0xff] (!%p158_p3)  ;;  %vm470_vm4 = vcmask (!%p158_p3), 916480  }
   0xd   : > { %691 = vmatpush3.bf16.msra.mxu1 (!%p158_p3), %v690_v8  ;;  %680 = vmatprep.subr.bf16.mxu0 (!%p158_p3), %v796_v3  ;;  %v212_v17 = vld [vmem:[%s982_s1 + $0x28] sm:$0xff] (!%p158_p3)  ;;  %v684_v18 = vpack.c.bf16 (!%p158_p3), %v576_v15, %v575_v14  ;;  %v578_v21 = vld [vmem:[%s982_s1 + $0x78] sm:$0xff] (!%p158_p3)  ;;  %v213_v22 = vld [vmem:[%s982_s1 + $0x30] sm:$0xff] (!%p158_p3) }
   0xe   : > { %692 = vmatprep.subr.bf16.mxu1 (!%p158_p3), %v796_v3  ;;  %v696_v19 = vpack.c.bf16 (!%p158_p3), %v212_v17, %v211_v16  ;;  %v214_v23 = vld [vmem:[%s982_s1 + $0x38] sm:$0xff] (!%p158_p3)  ;;  %v687_v26 = vpack.c.bf16 (!%p158_p3), %v578_v21, %v577_v20  ;;  %v581_v30 = vld [vmem:[%s982_s1 + $0x80] sm:$0xff] (!%p158_p3)  ;;  %v582_v31 = vld [vmem:[%s982_s1 + $0x88] sm:$0xff] (!%p158_p3) }
   0xf   : > { %v699_v29 = vpack.c.bf16 (!%p158_p3), %v214_v23, %v213_v22  ;;  %v702_v33 = vpack.c.bf16 (!%p158_p3), %v582_v31, %v581_v30  ;;  %v583_v34 = vld [vmem:[%s982_s1 + $0x90] sm:$0xff] (!%p158_p3)  ;;  %v584_v35 = vld [vmem:[%s982_s1 + $0x98] sm:$0xff] (!%p158_p3)  ;;  %v585_v37 = vld [vmem:[%s982_s1 + $0xa0] sm:$0xff] (!%p158_p3) }
  0x10   : > { %s996_s13 = smov (!%p188_p5, %s782_s13), 1  ;;  %s998_s12 = smov (!%p190_p6, %s778_s12), 1  ;;  %682 = vmatpush3.bf16.msra.mxu0 %v681_v12  ;;  %v705_v36 = vpack.c.bf16 %v584_v35, %v583_v34  ;;  %v586_v38 = vld [vmem:[%s982_s1 + $0xa8] sm:$0xff]  ;;  %v587_v40 = vld [vmem:[%s982_s1 + $0xb0] sm:$0xff]  ;;  %v588_v41 = vld [vmem:[%s982_s1 + $0xb8] sm:$0xff] }
  0x11   : > { %s567_s23 = sshll.u32 %s996_s13, 2  ;;  %s566_s24 = sshll.u32 %s998_s12, 1  ;;  %694 = vmatpush3.bf16.msra.mxu1 %v693_v13  ;;  %683 = vmatprep.subr.bf16.mxu0 %v796_v3  ;;  %v708_v39 = vpack.c.bf16 %v586_v38, %v585_v37  ;;  %v711_v43 = vpack.c.bf16 %v588_v41, %v587_v40  ;;  %v590_v52 = vld [vmem:[%s983_s2] ss:$0 sm:$0xff] }
  0x12   : > { %s194_s25 = sadd.s32 %s567_s23, %s566_s24  ;;  %695 = vmatprep.subr.bf16.mxu1 %v796_v3  ;;  %s569_s7 = sshll.u32 %s996_s13, 1 }
  0x13   : > { %s568_s30 = sshll.u32 %s194_s25, 3  ;;  %s202_s8 = sadd.s32 %s569_s7, %s998_s12 }
  0x14   : > { %s196_s10 = scalar_lea.vmem %s981_s0, %s568_s30  ;;  %685 = vmatpush3.bf16.msra.mxu0 %v684_v18  ;;  %s570_s11 = sshll.u32 %s202_s8, 3 }
  0x15   : > { %v205_v24 = vld [vmem:[%s196_s10] sm:$0xff]  ;;  %v206_v25 = vld [vmem:[%s196_s10 + $0x8] sm:$0x3]  ;;  %697 = vmatpush3.bf16.msra.mxu1 %v696_v19  ;;  %686 = vmatprep.subr.bf16.mxu0 %v796_v3  ;;  %s204_s21 = scalar_lea.vmem %s984_s3, %s570_s11 }
  0x16   : > { %v227_v27 = vrot.slane %v205_v24, 1  ;;  %v228_v28 = vrot.slane %v206_v25, 1  ;;  %698 = vmatprep.subr.bf16.mxu1 %v796_v3  ;;  %v386_v42 = vrot.slane %v206_v25, 2  ;;  %v385_v44 = vrot.slane %v205_v24, 2 }
  0x18   : > { %688 = vmatpush3.bf16.msra.mxu0 %v687_v26  ;;  %v229_v32 = vsel %vm226_vm1, %v227_v27, %v228_v28  ;;  %v387_v45 = vsel %vm384_vm3, %v385_v44, %v386_v42 }
  0x19   : > { %700 = vmatpush3.bf16.msra.mxu1 %v699_v29  ;;  %701 = vmatprep.subr.bf16.mxu0 %v796_v3 }
  0x1b   : > { %637 = vmatmul.mubr.msk.f32.vlgmr.msra.gmra.mrb[0].mxu0 %vm230_vm2, %v229_v32 }
  0x1c   : > { %656 = vmatmul.mubr.msk.f32.vlgmr.msra.gmra.mrb[0].mxu1 %vm230_vm2, %v205_v24  ;;  %703 = vmatpush3.bf16.msra.mxu0 %v702_v33 }
  0x1d   : > { %704 = vmatprep.subr.bf16.mxu0 %v796_v3  ;;  %674 = vmatprep.mubr.msk.f32.mxu0 %vm797_vm0, %v798_v11 }
  0x20   : > { %706 = vmatpush3.bf16.msra.mxu0 %v705_v36 }
  0x21   : > { %707 = vmatprep.subr.bf16.mxu0 %v796_v3 }
  0x24   : > { %709 = vmatpush3.bf16.msra.mxu0 %v708_v39 }
  0x25   : > { %710 = vmatprep.subr.bf16.mxu0 %v796_v3 }
  0x28   : > { %712 = vmatpush3.bf16.msra.mxu0 %v711_v43 }
  0x2b   : > { %675 = vmatmul.mubr.msk.f32.vlgmr.msra.gmra.mrb[2].mxu0 %vm230_vm2, %v387_v45 }
  0xee   : > { %v299_v46 = vpop.f32.mrb[0].mxu0 }
  0xef   : > { %v638_v47 = vpop.f32.mrb[1].mxu0  ;;  %v371_v48 = vpop.f32.mrb[0].mxu1 }
  0xf0   : > { %v372_v49 = vadd.f32 %v371_v48, %v299_v46  ;;  %v657_v50 = vpop.f32.mrb[1].mxu1 }
  0xfe   : > { %v456_v51 = vpop.f32.mrb[2].mxu0 }
  0xff   : > { %v460_v53 = vadd.f32 %v456_v51, %v372_v49  ;;  %v676_v54 = vpop.f32.mrb[3].mxu0 }
 0x101   : > { %v468_v55 = vadd.f32 %v590_v52, %v460_v53 }
 0x103   : > { %v469_v56 = vmax.f32 %v468_v55, 0.0 }
 0x105   : > { %471 = vst.msk [vmem:[%s204_s21] sm:$0xff] %vm470_vm4, %v469_v56 }
 0x106 PF: > { %s13_s16 = sadd.s32 1, %s794_s16   ;;  %s985_s12 = smov %s786_s14 }
 0x107   : > { %p10_p7 = scmp.ge.s32.totalorder %s13_s16, 6   ;;  %s986_s13 = smov %s790_s15 }
 0x108   : > { %s987_s14 = smov %s990_s17  ;;  %s988_s15 = smov %s994_s18 }
 0x109   :  { %12 = sbr.rel (!%p10_p7) target bundleno = 3 (0x3), region = 64 }

</bundles_post_ra>
